<compile_context>
chip_gen: v7x
topology: tpu7x:2x2x1
jax: 0.10.0
libtpu: 0.0.40
codegen_flags: <defaults>
</compile_context>

<pallas_src>
import functools

import jax
import jax.numpy as jnp
from jax.experimental import pallas as pl
from jax.experimental.pallas import tpu as pltpu

F32 = jnp.float32
BF16 = jnp.bfloat16
BN_EPS = 1e-5
GATE_EPS = 1e-6


def _round_up(x, m):
    return ((x + m - 1) // m) * m


# --------------------------------------------------------------------------
# Kernel 1: fused node projection  h @ [WA|WE|WD|WB] + [bA|bE|bD|bB]
# Emits pre-cast slabs so the edge kernel never re-slices / re-casts:
#   ah_ref : f32  [tile, D]      (Ah)
#   eh_ref : bf16 [tile, D]      (Eh)
#   db_ref : bf16 [tile, 2D]     ([Dh | Bh])
# --------------------------------------------------------------------------
def node_proj_kernel(h_ref, w_ref, b_ref, ah_ref, eh_ref, db_ref, *, dpad):
    proj = (jnp.dot(h_ref[...], w_ref[...], preferred_element_type=F32)
            + b_ref[...])                              # [tile, 4D], layout [Ah|Eh|Dh|Bh]
    ah_ref[...] = proj[:, 0:dpad]
    eh_ref[...] = proj[:, dpad:2 * dpad].astype(BF16)
    db_ref[...] = proj[:, 2 * dpad:4 * dpad].astype(BF16)


# --------------------------------------------------------------------------
# Kernel 2: edge/message kernel, tiled over edges ("arbitrary" reduction).
#   - builds bf16 one-hot connectivity on-chip from int32 index tiles
#   - e_new tile + sigma (padded edges masked out)
#   - accumulates per-node [num | den] in a VMEM scratch (transposed dot)
#   - accumulates edge-BN sum / sum-of-squares into a resident output
#   - on the last edge tile: gate, node BatchNorm (batch stats), ReLU, residual
# --------------------------------------------------------------------------
def edge_message_kernel(e_ref, src_ref, dst_ref, db_ref, eh_ref, ah_ref,
                        wc_ref, bc_ref, h_ref, gamma_h_ref, beta_h_ref,
                        e_new_ref, e_stats_ref, h_out_ref,
                        numden_acc, *, dpad, n_nodes, m_edges):
    m = pl.program_id(0)
    tM = e_ref.shape[0]
    n_pad = db_ref.shape[0]
    D = dpad

    @pl.when(m == 0)
    def _init():
        numden_acc[...] = jnp.zeros_like(numden_acc)
        e_stats_ref[...] = jnp.zeros_like(e_stats_ref)

    # Mask for padded (invalid) edge rows of this tile.
    row = m * tM + jax.lax.broadcasted_iota(jnp.int32, (tM, 1), 0)
    valid = (row < m_edges).astype(F32)                       # [tM, 1]

    # On-chip bf16 one-hot connectivity (no [M, N] HBM traffic).
    col = jax.lax.broadcasted_iota(jnp.int32, (tM, n_pad), 1)
    src_oh = (col == src_ref[...]).astype(BF16)                # [tM, Np]
    dst_oh = (col == dst_ref[...]).astype(BF16)                # [tM, Np]

    # Edge projection + one-hot gathers (bf16 MXU, f32 accumulation).
    ce = jnp.dot(e_ref[...], wc_ref[...], preferred_element_type=F32) + bc_ref[...]
    db_j = jnp.dot(src_oh, db_ref[...], preferred_element_type=F32)   # [tM, 2D]
    eh_i = jnp.dot(dst_oh, eh_ref[...], preferred_element_type=F32)   # [tM, D]
    dh_j = db_j[:, :D]
    bh_j = db_j[:, D:]

    e_new = ce + dh_j + eh_i
    sigma = jax.nn.sigmoid(e_new) * valid                      # padded edges -> 0
    e_new_ref[...] = e_new.astype(e_new_ref.dtype)

    # Edge-side BatchNorm statistics (valid edges only).
    e_masked = e_new * valid
    e_stats_ref[...] += jnp.concatenate(
        [jnp.sum(e_masked, axis=0, keepdims=True),
         jnp.sum(e_masked * e_masked, axis=0, keepdims=True)], axis=0)  # [2, D]

    # Per-node segment sums of [sigma*Bh_j | sigma]: one contraction over the
    # edge axis of dst_oh (no materialized [N, M] transpose).
    terms = jnp.concatenate([sigma * bh_j, sigma], axis=-1).astype(BF16)  # [tM, 2D]
    numden_acc[...] += jax.lax.dot_general(
        dst_oh, terms, dimension_numbers=(((0,), (0,)), ((), ())),
        preferred_element_type=F32)                                       # [Np, 2D]

    # Finalize node features on the last edge tile.
    @pl.when(m == pl.num_programs(0) - 1)
    def _finalize():
        num = numden_acc[:, 0:D]
        den = numden_acc[:, D:2 * D]
        h_new = ah_ref[...] + num * pl.reciprocal(den + GATE_EPS, approx=True)
        # Node BatchNorm with training-mode batch statistics over valid rows.
        nrow = jax.lax.broadcasted_iota(jnp.int32, (n_pad, 1), 0)
        nvalid = (nrow < n_nodes).astype(F32)
        inv_n = 1.0 / n_nodes
        mu = jnp.sum(h_new * nvalid, axis=0, keepdims=True) * inv_n
        diff = (h_new - mu) * nvalid
        var = jnp.sum(diff * diff, axis=0, keepdims=True) * inv_n
        h_bn = (gamma_h_ref[...] * (h_new - mu) * jax.lax.rsqrt(var + BN_EPS)
                + beta_h_ref[...])
        h_out_ref[...] = jnp.maximum(h_bn, 0.0) + h_ref[...]


# --------------------------------------------------------------------------
# Kernel 3: edge finalize — BatchNorm (batch stats) + ReLU + residual, tiled.
# --------------------------------------------------------------------------
def edge_finalize_kernel(e_new_ref, e_ref, stats_ref, gamma_e_ref, beta_e_ref,
                         e_out_ref, *, num_edges):
    inv_m = 1.0 / num_edges
    mean = stats_ref[0:1, :] * inv_m
    var = stats_ref[1:2, :] * inv_m - mean * mean    # biased (training) variance
    var = jnp.maximum(var, 0.0)                      # guard against f32 cancellation
    e_new = e_new_ref[...].astype(F32)
    e_bn = (gamma_e_ref[...] * (e_new - mean) * jax.lax.rsqrt(var + BN_EPS)
            + beta_e_ref[...])
    e_out_ref[...] = jnp.maximum(e_bn, 0.0) + e_ref[...]


# --------------------------------------------------------------------------
# Wrapper
# --------------------------------------------------------------------------
def gated_gcn_layer(h, e, src, dst, params, *, edge_tile=None,
                    vmem_limit_bytes=48 * 1024 * 1024):
    """h: [N, Din] node feats, e: [M, Din] edge feats, src/dst: [M] int32."""
    N, Din = h.shape
    M = e.shape[0]
    Dout = params["WA"].shape[1]
    assert Din == Dout, "residual path requires input_dim == output_dim"

    # ---- lane-dense padding (feature dim -> multiple of 128) ----------------
    D = _round_up(Dout, 128)
    node_tile = 256 if N > 256 else _round_up(N, 16)
    Np = _round_up(N, node_tile)
    if edge_tile is None:
        edge_tile = 512 if M >= 512 else _round_up(M, 16)
    edge_tile = _round_up(edge_tile, 16)
    Mp = _round_up(M, edge_tile)

    def pad2(x, rows, cols):
        return jnp.pad(x, ((0, rows - x.shape[0]), (0, cols - x.shape[1])))

    def padw(w):
        return pad2(w, D, D)

    def padb(b):
        return pad2(b, 1, D)

    h_p = pad2(h.astype(F32), Np, D)            # f32 residual copy
    e_p = pad2(e.astype(F32), Mp, D)
    h_bf = h_p.astype(BF16)
    e_bf = e_p.astype(BF16)

    # Fused node-projection weights, output layout [Ah | Eh | Dh | Bh].
    w_cat = jnp.concatenate(
        [padw(params["WA"]), padw(params["WE"]),
         padw(params["WD"]), padw(params["WB"])], axis=1).astype(BF16)   # [D, 4D]
    b_cat = jnp.concatenate(
        [padb(params["bA"]), padb(params["bE"]),
         padb(params["bD"]), padb(params["bB"])], axis=1)                # [1, 4D]
    wc_bf = padw(params["WC"]).astype(BF16)
    bc = padb(params["bC"])
    gamma_h = padb(params["gamma_h"])
    beta_h = padb(params["beta_h"])
    gamma_e = padb(params["gamma_e"])
    beta_e = padb(params["beta_e"])

    src_p = jnp.pad(src.astype(jnp.int32), (0, Mp - M)).reshape(Mp, 1)
    dst_p = jnp.pad(dst.astype(jnp.int32), (0, Mp - M)).reshape(Mp, 1)

    cparams = lambda sem: pltpu.CompilerParams(
        dimension_semantics=sem, vmem_limit_bytes=vmem_limit_bytes)

    # ---- 1) node projection, tiled over node rows ("parallel") --------------
    ah, eh_bf, db_bf = pl.pallas_call(
        functools.partial(node_proj_kernel, dpad=D),
        out_shape=(jax.ShapeDtypeStruct((Np, D), F32),
                   jax.ShapeDtypeStruct((Np, D), BF16),
                   jax.ShapeDtypeStruct((Np, 2 * D), BF16)),
        grid_spec=pltpu.PrefetchScalarGridSpec(
            num_scalar_prefetch=0,
            grid=(Np // node_tile,),
            in_specs=[pl.BlockSpec((node_tile, D), lambda i: (i, 0)),
                      pl.BlockSpec((D, 4 * D), lambda i: (0, 0)),
                      pl.BlockSpec((1, 4 * D), lambda i: (0, 0))],
            out_specs=[pl.BlockSpec((node_tile, D), lambda i: (i, 0)),
                       pl.BlockSpec((node_tile, D), lambda i: (i, 0)),
                       pl.BlockSpec((node_tile, 2 * D), lambda i: (i, 0))]),
        compiler_params=cparams(("parallel",)),
    )(h_bf, w_cat, b_cat)

    # ---- 2) edge/message kernel, tiled + pipelined over edges ---------------
    e_grid = (Mp // edge_tile,)

    def rep(shape):    # resident across the edge-tile reduction axis
        return pl.BlockSpec(shape, lambda m: (0,) * len(shape))

    def tile(shape):   # tiled over the edge dimension
        return pl.BlockSpec(shape, lambda m: (m, 0))

    e_new, e_stats, h_out = pl.pallas_call(
        functools.partial(edge_message_kernel, dpad=D, n_nodes=N, m_edges=M),
        out_shape=(jax.ShapeDtypeStruct((Mp, D), BF16),
                   jax.ShapeDtypeStruct((2, D), F32),
                   jax.ShapeDtypeStruct((Np, D), F32)),
        grid_spec=pltpu.PrefetchScalarGridSpec(
            num_scalar_prefetch=0,
            grid=e_grid,
            in_specs=[
                tile((edge_tile, D)),     # e (bf16)
                tile((edge_tile, 1)),     # src indices (int32)
                tile((edge_tile, 1)),     # dst indices (int32)
                rep((Np, 2 * D)),         # [Dh | Bh] bf16
                rep((Np, D)),             # Eh bf16
                rep((Np, D)),             # Ah f32
                rep((D, D)),              # W_C bf16
                rep((1, D)),              # b_C
                rep((Np, D)),             # h residual f32
                rep((1, D)),              # gamma_h
                rep((1, D)),              # beta_h
            ],
            out_specs=[
                tile((edge_tile, D)),     # e_new (pre-BN edge features, bf16)
                rep((2, D)),              # edge BN [sum; sum_sq] accumulator
                rep((Np, D)),             # h_out (written on last tile)
            ],
            scratch_shapes=[pltpu.VMEM((Np, 2 * D), F32)]),   # [num | den]
        compiler_params=cparams(("arbitrary",)),
    )(e_bf, src_p, dst_p, db_bf, eh_bf, ah, wc_bf, bc, h_p, gamma_h, beta_h)

    # ---- 3) edge finalize: BatchNorm (batch stats) + ReLU + residual --------
    e_out = pl.pallas_call(
        functools.partial(edge_finalize_kernel, num_edges=M),
        out_shape=jax.ShapeDtypeStruct((Mp, D), F32),
        grid_spec=pltpu.PrefetchScalarGridSpec(
            num_scalar_prefetch=0,
            grid=e_grid,
            in_specs=[
                tile((edge_tile, D)),     # e_new bf16
                tile((edge_tile, D)),     # e residual f32
                rep((2, D)),              # BN stats
                rep((1, D)),              # gamma_e
                rep((1, D)),              # beta_e
            ],
            out_specs=tile((edge_tile, D))),
        compiler_params=cparams(("parallel",)),
    )(e_new, e_p, e_stats, gamma_e, beta_e)

    return h_out[:N, :Dout], e_out[:M, :Dout]


def init_params(key, din, dout):
    ks = jax.random.split(key, 10)

    def lin(kw, kb):
        w = jax.random.normal(kw, (din, dout), jnp.float32) * 0.1
        b = jax.random.normal(kb, (1, dout), jnp.float32) * 0.01
        return w, b

    WA, bA = lin(ks[0], ks[1])
    WB, bB = lin(ks[2], ks[3])
    WC, bC = lin(ks[4], ks[5])
    WD, bD = lin(ks[6], ks[7])
    WE, bE = lin(ks[8], ks[9])
    return dict(WA=WA, bA=bA, WB=WB, bB=bB, WC=WC, bC=bC,
                WD=WD, bD=bD, WE=WE, bE=bE,
                gamma_h=jnp.ones((1, dout), jnp.float32),
                beta_h=jnp.zeros((1, dout), jnp.float32),
                gamma_e=jnp.ones((1, dout), jnp.float32),
                beta_e=jnp.zeros((1, dout), jnp.float32))


if __name__ == "__main__":
    N, M, D = 8, 32, 32          # nodes, edges, input_dim == output_dim
    key = jax.random.PRNGKey(0)
    k_h, k_e, k_p = jax.random.split(key, 3)

    h = jax.random.normal(k_h, (N, D), jnp.float32)
    e = jax.random.normal(k_e, (M, D), jnp.float32)

    # Edge list; every node receives incoming edges so the DGL zero-in-degree
    # passthrough case never triggers.
    idx = jnp.arange(N, dtype=jnp.int32)
    dst = jnp.concatenate([idx, (idx + 3) % N, (idx + 5) % N,
                           (idx + 1) % N]).astype(jnp.int32)       # [M]
    src = jnp.concatenate([(idx + 1) % N, (idx + 5) % N, (idx + 2) % N,
                           (idx + 6) % N]).astype(jnp.int32)       # [M]

    params = init_params(k_p, D, D)

    h_out, e_out = gated_gcn_layer(h, e, src, dst, params, edge_tile=16)
    jax.block_until_ready((h_out, e_out))
    assert h_out.shape == (N, D) and e_out.shape == (M, D)
    print("KERNEL_OK")
</pallas_src>

<mosaic_0001>
module attributes {stable_mosaic.version = 11 : i64} {
  func.func @node_proj_kernel(%arg0: i32, %arg1: memref<16x128xbf16, #tpu.memory_space<vmem>>, %arg2: memref<128x512xbf16, #tpu.memory_space<vmem>>, %arg3: memref<1x512xf32, #tpu.memory_space<vmem>>, %arg4: memref<16x128xf32, #tpu.memory_space<vmem>>, %arg5: memref<16x128xbf16, #tpu.memory_space<vmem>>, %arg6: memref<16x256xbf16, #tpu.memory_space<vmem>>) attributes {dimension_semantics = [#tpu.dimension_semantics<parallel>], iteration_bounds = array<i64: 1>, scalar_prefetch = 0 : i64, scratch_operands = 0 : i64, tpu.core_type = #tpu.core_type<tc>, window_params = [{transform_indices = @transform_0, window_bounds = array<i64: 16, 128>}, {pipeline_mode = #tpu.pipeline_mode<synchronous>, transform_indices = @transform_1, window_bounds = array<i64: 128, 512>}, {pipeline_mode = #tpu.pipeline_mode<synchronous>, transform_indices = @transform_2, window_bounds = array<i64: 1, 512>}, {transform_indices = @transform_3, window_bounds = array<i64: 16, 128>}, {transform_indices = @transform_4, window_bounds = array<i64: 16, 128>}, {transform_indices = @transform_5, window_bounds = array<i64: 16, 256>}]} {
    %c0 = arith.constant 0 : index
    %c0_0 = arith.constant 0 : index
    %0 = vector.load %arg1[%c0, %c0_0] : memref<16x128xbf16, #tpu.memory_space<vmem>>, vector<16x128xbf16>
    %c0_1 = arith.constant 0 : index
    %c0_2 = arith.constant 0 : index
    %1 = vector.load %arg2[%c0_1, %c0_2] : memref<128x512xbf16, #tpu.memory_space<vmem>>, vector<128x512xbf16>
    %cst = arith.constant dense<0.000000e+00> : vector<16x512xf32>
    %2 = tpu.matmul %0, %1, %cst {dimension_numbers = #tpu.dot_dimension_numbers<[1], [0], [0], [1], [0, 0, 1, 1], [], []>} : vector<16x128xbf16>, vector<128x512xbf16>, vector<16x512xf32> -> vector<16x512xf32>
    %c0_3 = arith.constant 0 : index
    %c0_4 = arith.constant 0 : index
    %3 = vector.load %arg3[%c0_3, %c0_4] : memref<1x512xf32, #tpu.memory_space<vmem>>, vector<1x512xf32>
    %4 = vector.broadcast %3 : vector<1x512xf32> to vector<16x512xf32>
    %5 = arith.addf %2, %4 : vector<16x512xf32>
    %6 = vector.extract_strided_slice %5 {offsets = [0, 0], sizes = [16, 128], strides = [1, 1]} : vector<16x512xf32> to vector<16x128xf32>
    %c0_5 = arith.constant 0 : index
    %c0_6 = arith.constant 0 : index
    %7 = vector.load %arg4[%c0_5, %c0_6] : memref<16x128xf32, #tpu.memory_space<vmem>>, vector<16x128xf32>
    tpu.vector_store %arg4[%c0_5, %c0_6], %6 {strides = array<i32>} : memref<16x128xf32, #tpu.memory_space<vmem>>, vector<16x128xf32>,
    %8 = vector.extract_strided_slice %5 {offsets = [0, 128], sizes = [16, 128], strides = [1, 1]} : vector<16x512xf32> to vector<16x128xf32>
    %9 = arith.truncf %8 : vector<16x128xf32> to vector<16x128xbf16>
    %c0_7 = arith.constant 0 : index
    %c0_8 = arith.constant 0 : index
    %10 = vector.load %arg5[%c0_7, %c0_8] : memref<16x128xbf16, #tpu.memory_space<vmem>>, vector<16x128xbf16>
    tpu.vector_store %arg5[%c0_7, %c0_8], %9 {strides = array<i32>} : memref<16x128xbf16, #tpu.memory_space<vmem>>, vector<16x128xbf16>,
    %11 = vector.extract_strided_slice %5 {offsets = [0, 256], sizes = [16, 256], strides = [1, 1]} : vector<16x512xf32> to vector<16x256xf32>
    %12 = arith.truncf %11 : vector<16x256xf32> to vector<16x256xbf16>
    %c0_9 = arith.constant 0 : index
    %c0_10 = arith.constant 0 : index
    %13 = vector.load %arg6[%c0_9, %c0_10] : memref<16x256xbf16, #tpu.memory_space<vmem>>, vector<16x256xbf16>
    tpu.vector_store %arg6[%c0_9, %c0_10], %12 {strides = array<i32>} : memref<16x256xbf16, #tpu.memory_space<vmem>>, vector<16x256xbf16>,
    return
  }
  func.func @transform_0(%arg0: i32) -> (i32, i32) {
    %c0_i32 = arith.constant 0 : i32
    %c0_i32_0 = arith.constant 0 : i32
    return %arg0, %c0_i32 : i32, i32
  }
  func.func @transform_1(%arg0: i32) -> (i32, i32) {
    %c0_i32 = arith.constant 0 : i32
    %c0_i32_0 = arith.constant 0 : i32
    %c0_i32_1 = arith.constant 0 : i32
    return %c0_i32, %c0_i32_0 : i32, i32
  }
  func.func @transform_2(%arg0: i32) -> (i32, i32) {
    %c0_i32 = arith.constant 0 : i32
    %c0_i32_0 = arith.constant 0 : i32
    %c0_i32_1 = arith.constant 0 : i32
    return %c0_i32, %c0_i32_0 : i32, i32
  }
  func.func @transform_3(%arg0: i32) -> (i32, i32) {
    %c0_i32 = arith.constant 0 : i32
    %c0_i32_0 = arith.constant 0 : i32
    return %arg0, %c0_i32 : i32, i32
  }
  func.func @transform_4(%arg0: i32) -> (i32, i32) {
    %c0_i32 = arith.constant 0 : i32
    %c0_i32_0 = arith.constant 0 : i32
    return %arg0, %c0_i32 : i32, i32
  }
  func.func @transform_5(%arg0: i32) -> (i32, i32) {
    %c0_i32 = arith.constant 0 : i32
    %c0_i32_0 = arith.constant 0 : i32
    return %arg0, %c0_i32 : i32, i32
  }
}

</mosaic_0001>

<bundles_post_ra>
// kernel: tpu_custom_call.1
= control target key start
LH: loop header
LB: loop body
LE: loop exit
PB: predicated region body
PF: predicated region fallthrough
CT: control target
= control target key end

     0   :  { %11 = vsyncpa [#allocation3], 0  ;;  %s794_s0 = inlined_call_operand.hbm [shape: bf16[16,128], index: 0, kind: input, shape index: {}]   ;;  %s795_s1 = inlined_call_operand.hbm [shape: bf16[128,512], index: 1, kind: input, shape index: {}]   ;;  %s796_s2 = inlined_call_operand.vmem [shape: f32[1,512], index: 2, kind: input, shape index: {}]   ;;  %s797_s3 = inlined_call_operand.hbm [shape: f32[16,128], index: 3, kind: output, shape index: {0}]   ;;  %s798_s4 = inlined_call_operand.hbm [shape: bf16[16,128], index: 4, kind: output, shape index: {1}]   ;;  %s799_s5 = inlined_call_operand.hbm [shape: bf16[16,256], index: 5, kind: output, shape index: {2}]  }
   0x1   :  { %12 = vsyncpa [#allocation6], 0 }
   0x2   :  { %13 = vsyncpa [#allocation4], 0 }
   0x3   :  { %14 = vsyncpa [#allocation9], 0  ;;  %s656_s18 = smov [#allocation2]   ;;  %s538_s22 = scalar_lea.hbm %s794_s0, 128 }
   0x4   :  { %s20_s19 = sshll.u32 %s656_s18, 4  ;;  %p539_p0 = scmp.ne.s32.totalorder %s794_s0, %s538_s22  ;;  %s21_s19 = int_to_ptr.vmem [resolvable:$true] %s20_s19 }
   0x5   :  { %p542_p1 = scmp.lt.u32.totalorder %s538_s22, %s794_s0 }
   0x7   :  { %p544_p2 = pnand %p542_p1, %p539_p0 }
   0x9   :  { %547 = shalt.err (!%p544_p2)
}
   0xa   :  { %s548_s27 = scalar_lea.vmem %s21_s19, 128  ;;  %p553_p4 = scmp.lt.s32.totalorder %s21_s19, %s21_s19 }
   0xb   :  { %p549_p3 = scmp.ne.s32.totalorder %s21_s19, %s548_s27  ;;  %p554_p5 = scmp.lt.s32.totalorder %s548_s27, %s548_s27 }
   0xd   :  { %p555_p6 = por %p554_p5, %p553_p4 }
   0xf   :  { %p556_p7 = pnand %p555_p6, %p549_p3 }
  0x11   :  { %559 = shalt.err (!%p556_p7)
}
  0x12   :  { %s657_s28 = smov 64   ;;  %s658_s29 = smov 4  }
  0x13   :  { %26 = dma.hbm_to_vmem [thread:$0]  %s794_s0, 128, %s21_s19, [#allocation3], %s657_s28, %s657_s28, %s658_s29  }
  0x14   :  { %s659_s7 = smov [#allocation5]   ;;  %s560_s11 = scalar_lea.hbm %s795_s1, 4096 }
  0x15   :  { %s32_s8 = sshll.u32 %s659_s7, 4  ;;  %p561_p8 = scmp.ne.s32.totalorder %s795_s1, %s560_s11  ;;  %s33_s8 = int_to_ptr.vmem [resolvable:$true] %s32_s8 }
  0x16   :  { %p564_p9 = scmp.lt.u32.totalorder %s560_s11, %s795_s1 }
  0x18   :  { %p566_p10 = pnand %p564_p9, %p561_p8 }
  0x1a   :  { %569 = shalt.err (!%p566_p10)
}
  0x1b   :  { %s570_s16 = scalar_lea.vmem %s33_s8, 4096  ;;  %p575_p12 = scmp.lt.s32.totalorder %s33_s8, %s33_s8 }
  0x1c   :  { %p571_p11 = scmp.ne.s32.totalorder %s33_s8, %s570_s16  ;;  %p576_p13 = scmp.lt.s32.totalorder %s570_s16, %s570_s16 }
  0x1e   :  { %p577_p0 = por %p576_p13, %p575_p12 }
  0x20   :  { %p578_p1 = pnand %p577_p0, %p571_p11 }
  0x22   :  { %581 = shalt.err (!%p578_p1)
}
  0x23   :  { %s660_s0 = smov 256   ;;  %s661_s17 = smov 16  }
  0x24   :  { %38 = dma.hbm_to_vmem [thread:$0]  %s795_s1, 4096, %s33_s8, [#allocation6], %s660_s0, %s660_s0, %s661_s17  }
  0x25   :  { %648 = dma.done.wait [#allocation3], 128  }
  0x26   :  { %649 = vsyncadd [#allocation3], 4294967168 }
  0x27   :  { %650 = dma.done.wait [#allocation6], 4096  }
  0x28   :  { %651 = vsyncadd [#allocation6], 4294963200  ;;  %v662_v0 = vmov 0   ;;  %v489_v1 = vld [vmem:[#allocation5 + $0x4] ss:$16 sps:$4 sm:$0xff]   ;;  %v537_v33 = vld [vmem:[#allocation2] sm:$0xff]   ;;  %v84_v34 = vlaneseq }
  0x29   :  { %302 = vmatprep.mubr.bf16.mxu0 %v662_v0  ;;  %345 = vmatprep.mubr.bf16.mxu1 %v662_v0  ;;  %v491_v2 = vld [vmem:[#allocation5 + $0xc] ss:$16 sps:$4 sm:$0xff]   ;;  %v493_v3 = vld [vmem:[#allocation5] ss:$16 sps:$4 sm:$0xff]   ;;  %v494_v4 = vld [vmem:[#allocation5 + $0x8] ss:$16 sps:$4 sm:$0xff]  }
  0x2a   :  { %270 = vmatprep.subr.bf16.mxu0 %v489_v1  ;;  %313 = vmatprep.subr.bf16.mxu1 %v491_v2  ;;  %v495_v5 = vld [vmem:[#allocation5 + $0x24] ss:$16 sps:$4 sm:$0xff]   ;;  %v497_v6 = vld [vmem:[#allocation5 + $0x2c] ss:$16 sps:$4 sm:$0xff]   ;;  %v499_v7 = vld [vmem:[#allocation5 + $0x20] ss:$16 sps:$4 sm:$0xff]  }
  0x2b   :  { %271 = vmatpush1.bf16.msra.mxu0 %v493_v3  ;;  %314 = vmatpush1.bf16.msra.mxu1 %v494_v4  ;;  %v500_v8 = vld [vmem:[#allocation5 + $0x28] ss:$16 sps:$4 sm:$0xff]   ;;  %v501_v9 = vld [vmem:[#allocation5 + $0x44] ss:$16 sps:$4 sm:$0xff]   ;;  %v503_v10 = vld [vmem:[#allocation5 + $0x4c] ss:$16 sps:$4 sm:$0xff]  }
  0x2c   :  { %272 = vmatprep.subr.bf16.mxu0 %v495_v5  ;;  %315 = vmatprep.subr.bf16.mxu1 %v497_v6  ;;  %v505_v11 = vld [vmem:[#allocation5 + $0x40] ss:$16 sps:$4 sm:$0xff]   ;;  %v506_v12 = vld [vmem:[#allocation5 + $0x48] ss:$16 sps:$4 sm:$0xff]   ;;  %v507_v13 = vld [vmem:[#allocation5 + $0x64] ss:$16 sps:$4 sm:$0xff]  }
  0x2d   :  { %v509_v14 = vld [vmem:[#allocation5 + $0x6c] ss:$16 sps:$4 sm:$0xff]   ;;  %v511_v15 = vld [vmem:[#allocation5 + $0x60] ss:$16 sps:$4 sm:$0xff]   ;;  %v512_v16 = vld [vmem:[#allocation5 + $0x68] ss:$16 sps:$4 sm:$0xff]  }
  0x2e   :  { %v513_v17 = vld [vmem:[#allocation5 + $0x84] ss:$16 sps:$4 sm:$0xff]   ;;  %v515_v18 = vld [vmem:[#allocation5 + $0x8c] ss:$16 sps:$4 sm:$0xff]   ;;  %v517_v19 = vld [vmem:[#allocation5 + $0x80] ss:$16 sps:$4 sm:$0xff]  }
  0x2f   :  { %273 = vmatpush1.bf16.msra.mxu0 %v499_v7  ;;  %316 = vmatpush1.bf16.msra.mxu1 %v500_v8  ;;  %v518_v20 = vld [vmem:[#allocation5 + $0x88] ss:$16 sps:$4 sm:$0xff]   ;;  %v519_v21 = vld [vmem:[#allocation5 + $0xa4] ss:$16 sps:$4 sm:$0xff]   ;;  %v521_v22 = vld [vmem:[#allocation5 + $0xac] ss:$16 sps:$4 sm:$0xff]  }
  0x30   :  { %274 = vmatprep.subr.bf16.mxu0 %v501_v9  ;;  %317 = vmatprep.subr.bf16.mxu1 %v503_v10  ;;  %v523_v23 = vld [vmem:[#allocation5 + $0xa0] ss:$16 sps:$4 sm:$0xff]   ;;  %v524_v24 = vld [vmem:[#allocation5 + $0xa8] ss:$16 sps:$4 sm:$0xff]   ;;  %v525_v25 = vld [vmem:[#allocation5 + $0xc4] ss:$16 sps:$4 sm:$0xff]  }
  0x31   :  { %v527_v26 = vld [vmem:[#allocation5 + $0xcc] ss:$16 sps:$4 sm:$0xff]   ;;  %v529_v27 = vld [vmem:[#allocation5 + $0xc0] ss:$16 sps:$4 sm:$0xff]   ;;  %v530_v28 = vld [vmem:[#allocation5 + $0xc8] ss:$16 sps:$4 sm:$0xff]  }
  0x32   :  { %v531_v29 = vld [vmem:[#allocation5 + $0xe4] ss:$16 sps:$4 sm:$0xff]   ;;  %v533_v30 = vld [vmem:[#allocation5 + $0xec] ss:$16 sps:$4 sm:$0xff]   ;;  %v535_v31 = vld [vmem:[#allocation5 + $0xe0] ss:$16 sps:$4 sm:$0xff]  }
  0x33   :  { %275 = vmatpush1.bf16.msra.mxu0 %v505_v11  ;;  %318 = vmatpush1.bf16.msra.mxu1 %v506_v12  ;;  %v536_v32 = vld [vmem:[#allocation5 + $0xe8] ss:$16 sps:$4 sm:$0xff]   ;;  %v85_v35 = vshrl.u32 %v84_v34, 7  ;;  %s663_s21 = smov [#allocation7]   ;;  %s664_s23 = smov [#allocation8]  }
  0x34   :  { %276 = vmatprep.subr.bf16.mxu0 %v507_v13  ;;  %319 = vmatprep.subr.bf16.mxu1 %v509_v14  ;;  %v82_v38 = vld [vmem:[%s796_s2] sm:$0xf]  ;;  %s387_s22 = sshll.u32 %s663_s21, 4  ;;  %s399_s24 = sshll.u32 %s664_s23, 4  ;;  %s728_s22 = int_to_ptr.vmem [resolvable:$true] %s387_s22  ;;  %s730_s24 = int_to_ptr.vmem [resolvable:$true] %s399_s24 }
  0x35   :  { %v86_v36 = vsub.s32 0, %v85_v35  ;;  %v94_v37 = vsub.s32 2, %v85_v35  ;;  %v98_v39 = vsub.s32 3, %v85_v35  ;;  %v90_v40 = vsub.s32 1, %v85_v35  ;;  %s665_s2 = smov [#allocation10]   ;;  %s582_s26 = scalar_lea.vmem %s728_s22, 256 }
  0x36   :  { %s411_s25 = sshll.u32 %s665_s2, 4  ;;  %p583_p2 = scmp.ne.s32.totalorder %s728_s22, %s582_s26  ;;  %s752_s25 = int_to_ptr.vmem [resolvable:$true] %s411_s25 }
  0x37   :  { %277 = vmatpush1.bf16.msra.mxu0 %v511_v15  ;;  %320 = vmatpush1.bf16.msra.mxu1 %v512_v16  ;;  %v87_v41 = vrot.slane %v82_v38, %v86_v36  ;;  %v95_v42 = vrot.slane %v82_v38, %v94_v37  ;;  %v99_v43 = vrot.slane %v82_v38, %v98_v39  ;;  %p587_p3 = scmp.lt.s32.totalorder %s728_s22, %s728_s22  ;;  %p588_p4 = scmp.lt.s32.totalorder %s582_s26, %s582_s26 }
  0x38   :  { %278 = vmatprep.subr.bf16.mxu0 %v513_v17  ;;  %321 = vmatprep.subr.bf16.mxu1 %v515_v18  ;;  %v91_v46 = vrot.slane %v82_v38, %v90_v40 }
  0x39   :  { %p589_p5 = por %p588_p4, %p587_p3 }
  0x3b   :  { %279 = vmatpush1.bf16.msra.mxu0 %v517_v19  ;;  %322 = vmatpush1.bf16.msra.mxu1 %v518_v20  ;;  %p590_p6 = pnand %p589_p5, %p583_p2 }
  0x3c   :  { %280 = vmatprep.subr.bf16.mxu0 %v519_v21  ;;  %323 = vmatprep.subr.bf16.mxu1 %v521_v22 }
  0x3f   :  { %281 = vmatpush1.bf16.msra.mxu0 %v523_v23  ;;  %324 = vmatpush1.bf16.msra.mxu1 %v524_v24 }
  0x40   :  { %282 = vmatprep.subr.bf16.mxu0 %v525_v25  ;;  %325 = vmatprep.subr.bf16.mxu1 %v527_v26 }
  0x43   :  { %283 = vmatpush1.bf16.msra.mxu0 %v529_v27  ;;  %326 = vmatpush1.bf16.msra.mxu1 %v530_v28 }
  0x44   :  { %284 = vmatprep.subr.bf16.mxu0 %v531_v29  ;;  %327 = vmatprep.subr.bf16.mxu1 %v533_v30 }
  0x47   :  { %285 = vmatpush1.bf16.msra.mxu0 %v535_v31  ;;  %328 = vmatpush1.bf16.msra.mxu1 %v536_v32 }
  0x4a   :  { %303 = vmatmul.mubr.bf16.vlgmr.msra.gmra.mrb[0].mxu0 %v537_v33  ;;  %346 = vmatmul.mubr.bf16.vlgmr.msra.gmra.mrb[0].mxu1 %v537_v33 }
 0x11d   :  { %v304_v44 = vpop.f32.mrb[0].mxu0  ;;  %v347_v45 = vpop.f32.mrb[0].mxu1 }
 0x11e   :  { %v305_v47 = vadd.f32 %v304_v44, %v87_v41  ;;  %v348_v48 = vadd.f32 %v347_v45, %v95_v42  ;;  %v306_v49 = vpop.f32.mrb[1].mxu0  ;;  %v349_v50 = vpop.f32.mrb[1].mxu1 }
 0x11f   :  { %v350_v51 = vadd.f32 %v349_v50, %v99_v43  ;;  %v308_v52 = vpop.f32.mrb[2].mxu0  ;;  %v351_v53 = vpop.f32.mrb[2].mxu1  ;;  %v307_v58 = vadd.f32 %v306_v49, %v91_v46 }
 0x120   :  { %356 = vst [vmem:[#allocation7] sm:$0xff] %v305_v47  ;;  %v309_v54 = vadd.f32 %v308_v52, %v87_v41  ;;  %v352_v55 = vadd.f32 %v351_v53, %v95_v42  ;;  %v310_v56 = vpop.f32.mrb[3].mxu0  ;;  %v353_v57 = vpop.f32.mrb[3].mxu1 }
 0x121   :  { %v470_v59 = vpack.c.bf16 %v350_v51, %v348_v48  ;;  %v311_v60 = vadd.f32 %v310_v56, %v91_v46  ;;  %v354_v61 = vadd.f32 %v353_v57, %v99_v43 }
 0x122   :  { %357 = vst [vmem:[#allocation7 + $0x8] sm:$0xff] %v309_v54 }
 0x123   :  { %380 = vst [vmem:[#allocation10] sm:$0xff] %v470_v59  ;;  %v475_v62 = vpack.c.bf16 %v311_v60, %v307_v58  ;;  %v471_v63 = vpack.c.bf16 %v354_v61, %v352_v55 }
 0x124   :  { %593 = shalt.err (!%p590_p6)
}
 0x125   :  { %s594_s6 = scalar_lea.hbm %s797_s3, 256 }
 0x126   :  { %p595_p7 = scmp.ne.s32.totalorder %s797_s3, %s594_s6  ;;  %p598_p8 = scmp.lt.u32.totalorder %s594_s6, %s797_s3 }
 0x128   :  { %p600_p9 = pnand %p598_p8, %p595_p7 }
 0x12a   :  { %603 = shalt.err (!%p600_p9)
}
 0x12b   :  { %s666_s11 = smov 128   ;;  %s667_s12 = smov 8   ;;  %476 = vst [vmem:[#allocation8] sm:$0xff] %v475_v62   ;;  %381 = vst [vmem:[#allocation10 + $0x8] sm:$0xff] %v471_v63 }
 0x12c   :  { %393 = dma.vmem_to_hbm [thread:$0]  %s728_s22, 256, %s797_s3, [#allocation4], %s666_s11, %s666_s11, %s667_s12  }
 0x12d   :  { %s604_s15 = scalar_lea.vmem %s730_s24, 128  ;;  %p609_p11 = scmp.lt.s32.totalorder %s730_s24, %s730_s24 }
 0x12e   :  { %p605_p10 = scmp.ne.s32.totalorder %s730_s24, %s604_s15  ;;  %p610_p12 = scmp.lt.s32.totalorder %s604_s15, %s604_s15 }
 0x130   :  { %p611_p13 = por %p610_p12, %p609_p11 }
 0x132   :  { %p612_p0 = pnand %p611_p13, %p605_p10 }
 0x134   :  { %615 = shalt.err (!%p612_p0)
}
 0x135   :  { %s616_s17 = scalar_lea.hbm %s798_s4, 128 }
 0x136   :  { %p617_p1 = scmp.ne.s32.totalorder %s798_s4, %s616_s17  ;;  %p620_p2 = scmp.lt.u32.totalorder %s616_s17, %s798_s4 }
 0x138   :  { %p622_p3 = pnand %p620_p2, %p617_p1 }
 0x13a   :  { %625 = shalt.err (!%p622_p3)
}
 0x13b   :  { %405 = dma.vmem_to_hbm [thread:$0]  %s730_s24, 128, %s798_s4, [#allocation9], %s657_s28, %s657_s28, %s658_s29  }
 0x13c   :  { %s626_s22 = scalar_lea.vmem %s752_s25, 256  ;;  %p631_p5 = scmp.lt.s32.totalorder %s752_s25, %s752_s25 }
 0x13d   :  { %p627_p4 = scmp.ne.s32.totalorder %s752_s25, %s626_s22  ;;  %p632_p6 = scmp.lt.s32.totalorder %s626_s22, %s626_s22 }
 0x13f   :  { %p633_p7 = por %p632_p6, %p631_p5 }
 0x141   :  { %p634_p8 = pnand %p633_p7, %p627_p4 }
 0x143   :  { %637 = shalt.err (!%p634_p8)
}
 0x144   :  { %s638_s26 = scalar_lea.hbm %s799_s5, 256 }
 0x145   :  { %p639_p9 = scmp.ne.s32.totalorder %s799_s5, %s638_s26  ;;  %p642_p10 = scmp.lt.u32.totalorder %s638_s26, %s799_s5 }
 0x147   :  { %p644_p11 = pnand %p642_p10, %p639_p9 }
 0x149   :  { %647 = shalt.err (!%p644_p11)
}
 0x14a   :  { %417 = dma.vmem_to_hbm [thread:$0]  %s752_s25, 256, %s799_s5, [#allocation9], %s666_s11, %s666_s11, %s667_s12  }
 0x14b   :  { %652 = dma.done.wait [#allocation4], 256  }
 0x14c   :  { %653 = vsyncadd [#allocation4], 4294967040 }
 0x14d   :  { %654 = dma.done.wait [#allocation9], 384  }
 0x14e   :  { %655 = vsyncadd [#allocation9], 4294966912 }
 0x14f   :  { %427 = vsyncpa [#allocation3], 1 }
 0x150   :  { %428 = vsyncpa [#allocation6], 1 }
 0x151   :  { %429 = vsyncpa [#allocation4], 1 }
 0x152   :  { %430 = vsyncpa [#allocation9], 1 }

</bundles_post_ra>
